<compile_context>
chip_gen: v5e
topology: v5e:2x2
jax: 0.10.0
libtpu: 0.0.40
codegen_flags: <defaults>
</compile_context>

<pallas_src>
import functools

import numpy as np
import jax
import jax.numpy as jnp
from jax.experimental import pallas as pl
from jax.experimental.pallas import tpu as pltpu


# ------------------------- Pallas kernels -------------------------

def _forward_kernel(tau_ref, o_ref, *, gamma, scale):
    """log_temp = log(exp(tau^2 * gamma) * scale - 1)  (elementwise)."""
    t = tau_ref[...]
    o_ref[...] = jnp.log(jnp.exp(t * t * gamma) * scale - 1.0)


def _get_tau_kernel(lt_ref, o_ref, *, inv_scale, inv_gamma):
    """tau = sqrt(log((exp(log_temp) + 1) * inv_scale) * inv_gamma).

    Reciprocals are host-precomputed so no vector divide is emitted.
    """
    x = lt_ref[...]
    o_ref[...] = jnp.sqrt(jnp.log((jnp.exp(x) + 1.0) * inv_scale) * inv_gamma)


# ------------------------- Elementwise launcher -------------------------

_LANES = 128
_MIN_TILE = 8 * _LANES        # smallest legal (8,128) f32 slab = 4 KiB
_MAX_BLOCK_ROWS = 1024        # (1024,128) f32 block = 512 KiB per buffer


def _elementwise_pallas(kernel_body, x):
    """Run an elementwise kernel over an arbitrary-shaped tensor.

    Flattens to a lane-dense (rows, 128) f32 slab, picks the largest block that
    keeps >=2 grid steps when possible, and lets Pallas mask the partial final
    block (pl.cdiv grid) so no pad-to-block-multiple copy is ever made.
    """
    orig_shape = x.shape
    orig_dtype = x.dtype
    flat = x.reshape(-1).astype(jnp.float32)
    n = flat.shape[0]

    # Only pad up to the minimum (8,128) slab granularity; inputs whose size is
    # already a multiple of 1024 elements (the common case for real tensors)
    # reshape for free with no copy.
    padded = ((n + _MIN_TILE - 1) // _MIN_TILE) * _MIN_TILE
    if padded != n:
        flat = jnp.pad(flat, (0, padded - n))
    rows = padded // _LANES
    x2d = flat.reshape(rows, _LANES)

    # Block sizing: big blocks for pipeline efficiency, but keep >=2 grid steps
    # when there is enough work so the "parallel" axis can shard across the two
    # TensorCores of a v7x chip.
    if rows > _MAX_BLOCK_ROWS:
        block_rows = _MAX_BLOCK_ROWS
    elif rows >= 16:
        block_rows = ((rows // 2 + 7) // 8) * 8
    else:
        block_rows = rows
    grid = (pl.cdiv(rows, block_rows),)

    # NOTE: a production wrapper could short-circuit sub-tile inputs (n < 1024)
    # to plain jnp to skip pallas_call launch overhead; kept on the kernel path
    # here so the demo always exercises the kernel.

    out = pl.pallas_call(
        kernel_body,
        out_shape=jax.ShapeDtypeStruct((rows, _LANES), jnp.float32),
        grid=grid,
        in_specs=[pl.BlockSpec((block_rows, _LANES), lambda i: (i, 0))],
        out_specs=pl.BlockSpec((block_rows, _LANES), lambda i: (i, 0)),
        compiler_params=pltpu.CompilerParams(
            dimension_semantics=("parallel",)),
    )(x2d)

    return out.reshape(-1)[:n].reshape(orig_shape).astype(orig_dtype)


# ------------------------- Scheduler wrapper -------------------------

class LinearBetaNoiseScheduler:
    """JAX/Pallas port of LinearBetaNoiseScheduler."""

    def __init__(self, min_temp=1e-3, max_temp=1e3):
        self.scale = 1.0 + float(min_temp)
        self.gamma = float(np.log((1.0 + float(max_temp)) / self.scale))
        # Host-precomputed reciprocals: the get_tau kernel multiplies instead of
        # dividing, keeping the EUP free for the unavoidable exp/log/sqrt.
        self._inv_scale = 1.0 / self.scale
        self._inv_gamma = 1.0 / self.gamma

        self._fwd_kernel = functools.partial(
            _forward_kernel, gamma=self.gamma, scale=self.scale)
        self._tau_kernel = functools.partial(
            _get_tau_kernel, inv_scale=self._inv_scale, inv_gamma=self._inv_gamma)

    def forward(self, tau):
        return _elementwise_pallas(self._fwd_kernel, tau)

    def get_tau(self, log_temp):
        return _elementwise_pallas(self._tau_kernel, log_temp)

    def __call__(self, tau):
        return self.forward(tau)


# ------------------------- Main -------------------------

if __name__ == "__main__":
    key = jax.random.PRNGKey(0)
    # small shape consistent with the module: batch=2, seq=8 diffusion times
    tau = jax.random.uniform(key, (2, 8), dtype=jnp.float32)

    sched = LinearBetaNoiseScheduler(min_temp=1e-3, max_temp=1e3)

    log_temp = jax.block_until_ready(sched(tau))

    # reference: same closed-form math in plain jnp
    ref = jnp.log(jnp.exp(tau ** 2 * sched.gamma) * sched.scale - 1.0)
    np.testing.assert_allclose(np.asarray(log_temp), np.asarray(ref),
                               rtol=1e-5, atol=1e-5)

    # round-trip sanity: get_tau(forward(tau)) ~= tau (also via the kernel)
    tau_rt = jax.block_until_ready(sched.get_tau(log_temp))
    np.testing.assert_allclose(np.asarray(tau_rt), np.asarray(tau),
                               rtol=1e-3, atol=1e-3)

    # second small case exercising a multi-block parallel grid (2048 elements
    # -> 16 rows -> 2 grid steps)
    tau2 = jax.random.uniform(jax.random.PRNGKey(1), (4, 8, 64),
                              dtype=jnp.float32)
    lt2 = jax.block_until_ready(sched(tau2))
    ref2 = jnp.log(jnp.exp(tau2 ** 2 * sched.gamma) * sched.scale - 1.0)
    np.testing.assert_allclose(np.asarray(lt2), np.asarray(ref2),
                               rtol=1e-5, atol=1e-5)

    assert log_temp.shape == tau.shape and log_temp.dtype == tau.dtype
    print("KERNEL_OK")
</pallas_src>

<mosaic_0001>
module attributes {stable_mosaic.version = 11 : i64} {
  func.func @_forward_kernel(%arg0: i32, %arg1: memref<8x128xf32, #tpu.memory_space<vmem>>, %arg2: memref<8x128xf32, #tpu.memory_space<vmem>>) attributes {dimension_semantics = [#tpu.dimension_semantics<parallel>], iteration_bounds = array<i64: 1>, scalar_prefetch = 0 : i64, scratch_operands = 0 : i64, tpu.core_type = #tpu.core_type<tc>, window_params = [{transform_indices = @transform_0, window_bounds = array<i64: 8, 128>}, {transform_indices = @transform_1, window_bounds = array<i64: 8, 128>}]} {
    %c0 = arith.constant 0 : index
    %c0_0 = arith.constant 0 : index
    %0 = vector.load %arg1[%c0, %c0_0] : memref<8x128xf32, #tpu.memory_space<vmem>>, vector<8x128xf32>
    %1 = arith.mulf %0, %0 : vector<8x128xf32>
    %cst = arith.constant 6.90775537 : f32
    %2 = vector.broadcast %cst : f32 to vector<8x128xf32>
    %3 = arith.mulf %1, %2 : vector<8x128xf32>
    %4 = math.exp %3 : vector<8x128xf32>
    %cst_1 = arith.constant 1.001000e+00 : f32
    %5 = vector.broadcast %cst_1 : f32 to vector<8x128xf32>
    %6 = arith.mulf %4, %5 : vector<8x128xf32>
    %cst_2 = arith.constant 1.000000e+00 : f32
    %7 = vector.broadcast %cst_2 : f32 to vector<8x128xf32>
    %8 = arith.subf %6, %7 : vector<8x128xf32>
    %9 = math.log %8 : vector<8x128xf32>
    %c0_3 = arith.constant 0 : index
    %c0_4 = arith.constant 0 : index
    %10 = vector.load %arg2[%c0_3, %c0_4] : memref<8x128xf32, #tpu.memory_space<vmem>>, vector<8x128xf32>
    tpu.vector_store %arg2[%c0_3, %c0_4], %9 {strides = array<i32>} : memref<8x128xf32, #tpu.memory_space<vmem>>, vector<8x128xf32>,
    return
  }
  func.func @transform_0(%arg0: i32) -> (i32, i32) {
    %c0_i32 = arith.constant 0 : i32
    %c0_i32_0 = arith.constant 0 : i32
    return %arg0, %c0_i32 : i32, i32
  }
  func.func @transform_1(%arg0: i32) -> (i32, i32) {
    %c0_i32 = arith.constant 0 : i32
    %c0_i32_0 = arith.constant 0 : i32
    return %arg0, %c0_i32 : i32, i32
  }
}

</mosaic_0001>

<bundles_post_ra>
// kernel: tpu_custom_call.1
= control target key start
LH: loop header
LB: loop body
LE: loop exit
PB: predicated region body
PF: predicated region fallthrough
CT: control target
= control target key end

     0   :  { %6 = vsyncpa [#allocation3], 0  ;;  %s127_s0 = inlined_call_operand.hbm [shape: f32[8,128], index: 0, kind: input, shape index: {}]   ;;  %s128_s1 = inlined_call_operand.hbm [shape: f32[8,128], index: 1, kind: output, shape index: {}]  }
   0x1   :  { %7 = vsyncpa [#allocation4], 0  ;;  %s13_s8 = sshll.u32 %s127_s0, 4  ;;  %s109_s9 = smov [#allocation2]   ;;  %s14_s8 = int_to_ptr.hbm [resolvable:$true] %s13_s8 }
   0x2   :  { %s15_s10 = sshll.u32 %s109_s9, 4  ;;  %s16_s10 = int_to_ptr.vmem [resolvable:$true] %s15_s10 }
   0x3   :  { %18 = dma.hbm_to_vmem [thread:$0]  %s14_s8, 128, %s16_s10, [#allocation3]  }
   0x4   :  { %105 = dma.done.wait [#allocation3], 128  }
   0x5   :  { %106 = vsyncadd [#allocation3], 4294967168  ;;  %v23_v0 = vld [vmem:[#allocation2] sm:$0xff]  ;;  %s110_s11 = smov [#allocation5]   ;;  %s40_s14 = sshll.u32 %s128_s1, 4  ;;  %s41_s14 = int_to_ptr.hbm [resolvable:$true] %s40_s14 }
   0x6   :  { %v24_v1 = vmul.f32 %v23_v0, %v23_v0  ;;  %s38_s12 = sshll.u32 %s110_s11, 4  ;;  %s39_s12 = int_to_ptr.vmem [resolvable:$true] %s38_s12 }
   0x8   :  { %v25_v2 = vmul.f32 6.9077554, %v24_v1 }
   0xa   :  { %v26_v3 = vmul.f32 1.442695, %v25_v2 }
   0xc   :  { %53 = vpow2.f32 %v26_v3 }
  0x12   :  { %v54_v4 = vpop.eup %53 }
  0x13   :  { %v28_v5 = vmul.f32 1.001, %v54_v4 }
  0x15   :  { %v50_v6 = vadd.f32 -1.0, %v28_v5 }
  0x17   :  { %55 = vlog2.f32 %v50_v6 }
  0x1d   :  { %v56_v7 = vpop.eup %55 }
  0x1e   :  { %v31_v8 = vmul.f32 0.6931472, %v56_v7 }
  0x20   :  { %32 = vst [vmem:[#allocation5] sm:$0xff] %v31_v8 }
  0x21   :  { %43 = dma.vmem_to_hbm [thread:$0]  %s39_s12, 128, %s41_s14, [#allocation4]  }
  0x22   :  { %107 = dma.done.wait [#allocation4], 128  }
  0x23   :  { %108 = vsyncadd [#allocation4], 4294967168 }
  0x24   :  { %48 = vsyncpa [#allocation3], 1 }
  0x25   :  { %49 = vsyncpa [#allocation4], 1 }

</bundles_post_ra>
